<compile_context>
chip_gen: v7x
topology: tpu7x:2x2x1
jax: 0.10.0
libtpu: 0.0.40
codegen_flags: <defaults>
</compile_context>

<pallas_src>
import functools
import math

import jax
import jax.numpy as jnp
from jax.experimental import pallas as pl
from jax.experimental.pallas import tpu as pltpu

ALPHA_RANGE = (0.001, 100.0)
LOG_L = math.log(ALPHA_RANGE[0])
LOG_R = math.log(ALPHA_RANGE[1])
LEAKY_SLOPE = 0.01  # nn.LeakyReLU default


def _vmem_budgets():
    """Generation-aware (block_budget_bytes, vmem_limit_bytes) for kernel 2."""
    cap = None
    try:
        info = pltpu.get_tpu_info()
        for name in ("vmem_capacity_bytes", "vmem_size_bytes", "vmem_bytes"):
            v = getattr(info, name, None)
            if v:
                cap = int(v)
                break
    except Exception:
        cap = None
    if cap is not None and cap > (64 << 20):
        return 32 << 20, 64 << 20          # v5e / v6e: 128 MiB physical VMEM
    return 24 << 20, 32 << 20              # v7x (64 MiB) and safe default


# ----------------------------------------------------------------------------
# Kernel 1: tiled GAP (spatial reduction) + 2-layer MLP -> per-(B,3) alpha
# ----------------------------------------------------------------------------
def _param_kernel(feat_ref, w1_ref, b1_ref, w2_ref, b2_ref, alpha_ref, acc_ref,
                  *, s_true, tile_s, need_mask, inv_count):
    s = pl.program_id(0)

    @pl.when(s == 0)
    def _():
        acc_ref[...] = jnp.zeros_like(acc_ref)

    x = feat_ref[...].astype(jnp.float32)                  # (B, Cf, tile_s)
    if need_mask:
        # mask the out-of-bounds tail of the last (partial) block in-kernel
        col = jax.lax.broadcasted_iota(jnp.int32, x.shape, 2) + s * tile_s
        x = jnp.where(col < s_true, x, 0.0)
    acc_ref[...] += jnp.sum(x, axis=-1)                    # partial GAP sum

    @pl.when(s == pl.num_programs(0) - 1)
    def _():
        gap = acc_ref[...] * inv_count                     # mean over true S
        h = jnp.dot(gap, w1_ref[...],
                    preferred_element_type=jnp.float32) + b1_ref[...]
        h = jnp.where(h > 0, h, LEAKY_SLOPE * h)           # LeakyReLU
        p = jnp.dot(h, w2_ref[...],
                    preferred_element_type=jnp.float32) + b2_ref[...]
        t01 = jnp.tanh(p) * 0.5 + 0.5                      # tanh01
        alpha_ref[...] = jnp.exp(t01 * (LOG_R - LOG_L) + LOG_L)


# ----------------------------------------------------------------------------
# Kernel 2: reciprocal curve   out = (a+1)*img / (img + a)
# ----------------------------------------------------------------------------
def _enhance_kernel(alpha_ref, img_ref, out_ref, *, n_r):
    # flattened grid: bc = i // n_r   (per-(b,c) scalar alpha from SMEM)
    a = alpha_ref[pl.program_id(0) // n_r]
    ap1 = a + 1.0                                          # hoisted per block
    img = img_ref[...].astype(jnp.float32)                 # (1, R_TILE, LANE)
    # exact reciprocal; approx=True + 1 NR step only if ever VALU-bound
    inv = pl.reciprocal(img + a, approx=False)
    out_ref[...] = (ap1 * img * inv).astype(out_ref.dtype)


def _enhance_kernel_ragged(alpha_ref, img_ref, out_ref):
    a = alpha_ref[...]                                     # (BC, 1) f32, lane-bcast
    img = img_ref[...].astype(jnp.float32)                 # (BC, TILE)
    inv = pl.reciprocal(img + a, approx=False)
    out_ref[...] = ((a + 1.0) * img * inv).astype(out_ref.dtype)


def v60_image_level_enhancement(feat, low, w1, b1, w2, b2):
    """feat: (B, 16, Hp, Wp) NCHW features;  low: (B, 3, H, W) NCHW image."""
    B, Cf, Hp, Wp = feat.shape
    Bl, C, H, W = low.shape
    assert B == Bl
    assert C == 3, "reciprocal-curve filter regresses 3 per-channel alphas"

    # ------------------------- kernel 1: alpha (B, 3) -------------------------
    S = Hp * Wp
    feat_item = jnp.dtype(feat.dtype).itemsize
    # ~4 MiB of double-buffered feature blocks
    tile_s = max(128, ((4 << 20) // (2 * B * Cf * feat_item)) // 128 * 128)
    if tile_s >= S:
        tile_s = S                      # full-dim block: no OOB tail at all
    n_s = -(-S // tile_s)
    need_mask = (S % tile_s) != 0       # only the last block has an OOB tail

    feat3 = feat.reshape(B, Cf, S)      # metadata-only reshape (no HBM pass)

    alpha = pl.pallas_call(
        functools.partial(_param_kernel, s_true=S, tile_s=tile_s,
                          need_mask=need_mask, inv_count=1.0 / S),
        out_shape=jax.ShapeDtypeStruct((B, 3), jnp.float32),
        grid=(n_s,),
        in_specs=[
            pl.BlockSpec((B, Cf, tile_s), lambda s: (0, 0, s)),
            pl.BlockSpec((Cf, Cf), lambda s: (0, 0)),
            pl.BlockSpec((1, Cf), lambda s: (0, 0)),
            pl.BlockSpec((Cf, 3), lambda s: (0, 0)),
            pl.BlockSpec((1, 3), lambda s: (0, 0)),
        ],
        out_specs=pl.BlockSpec((B, 3), lambda s: (0, 0)),
        scratch_shapes=[pltpu.VMEM((B, Cf), jnp.float32)],
        compiler_params=pltpu.CompilerParams(
            dimension_semantics=("arbitrary",)),
    )(feat3,
      w1.astype(jnp.float32), b1.reshape(1, Cf).astype(jnp.float32),
      w2.astype(jnp.float32), b2.reshape(1, 3).astype(jnp.float32))

    # -------------------- kernel 2: per-pixel reciprocal curve ----------------
    BC = B * C
    HW = H * W
    img_item = jnp.dtype(low.dtype).itemsize
    budget, vmem_limit = _vmem_budgets()
    sub_mult = 8 * max(1, 4 // img_item)        # 8 f32 / 16 bf16 / 32 int8 rows

    # largest multiple of 128 (<= 2048) that divides HW -> pad-free lane layout
    lane = 0
    for cand in range(2048, 0, -128):
        if HW % cand == 0:
            lane = cand
            break

    cost = pl.CostEstimate(flops=4 * BC * HW, transcendentals=0,
                           bytes_accessed=2 * BC * HW * img_item)

    if lane:
        # lane-dense (BC, r, lane) view; r * lane == HW exactly (free reshape)
        r = HW // lane
        r_tile = max(1, budget // (4 * lane * img_item))   # 2x(in+out) buffers
        r_tile = min(r_tile, r)
        if r >= sub_mult:
            r_tile = max(sub_mult, (r_tile // sub_mult) * sub_mult)
        else:
            r_tile = r                                     # full-dim block
        n_r = -(-r // r_tile)

        img3d = low.reshape(BC, r, lane)
        alpha_bc = alpha.reshape(BC)                       # per-(b,c) -> SMEM

        out3d = pl.pallas_call(
            functools.partial(_enhance_kernel, n_r=n_r),
            out_shape=jax.ShapeDtypeStruct((BC, r, lane), low.dtype),
            grid=(BC * n_r,),                              # flattened: megacore-friendly
            in_specs=[
                pl.BlockSpec(memory_space=pltpu.MemorySpace.SMEM),      # alpha
                pl.BlockSpec((1, r_tile, lane),
                             lambda i: (i // n_r, i % n_r, 0)),
            ],
            out_specs=pl.BlockSpec((1, r_tile, lane),
                                   lambda i: (i // n_r, i % n_r, 0)),
            compiler_params=pltpu.CompilerParams(
                dimension_semantics=("parallel",),
                vmem_limit_bytes=vmem_limit),
            cost_estimate=cost,
        )(alpha_bc, img3d)
        return out3d.reshape(B, C, H, W)                   # already low.dtype

    # ---- ragged fallback (HW not a multiple of 128): no pad / no crop --------
    # 2-D blocks over (BC, HW); last block is partial (bounded read, dropped
    # OOB writes).  Slightly less lane-efficient, but still exactly 2 HBM passes.
    tile = max(128, (budget // (4 * BC * img_item)) // 128 * 128)
    if tile >= HW:
        tile = HW
    n_t = -(-HW // tile)
    img2d = low.reshape(BC, HW)
    alpha2 = alpha.reshape(BC, 1)

    out2d = pl.pallas_call(
        _enhance_kernel_ragged,
        out_shape=jax.ShapeDtypeStruct((BC, HW), low.dtype),
        grid=(n_t,),
        in_specs=[
            pl.BlockSpec((BC, 1), lambda j: (0, 0)),
            pl.BlockSpec((BC, tile), lambda j: (0, j)),
        ],
        out_specs=pl.BlockSpec((BC, tile), lambda j: (0, j)),
        compiler_params=pltpu.CompilerParams(
            dimension_semantics=("parallel",),
            vmem_limit_bytes=vmem_limit),
        cost_estimate=cost,
    )(alpha2, img2d)
    return out2d.reshape(B, C, H, W)


if __name__ == "__main__":
    key = jax.random.PRNGKey(0)
    k1, k2, k3, k4, k5, k6 = jax.random.split(key, 6)

    B, Cf, Hp, Wp = 2, 16, 8, 8      # feature branch (fc expects 16 channels)
    C, H, W = 3, 16, 16              # image branch

    feat = jax.random.normal(k1, (B, Cf, Hp, Wp), jnp.float32)
    low = jax.random.uniform(k2, (B, C, H, W), jnp.float32, minval=0.01, maxval=1.0)

    # Parameters of fc = [Linear(16,16), LeakyReLU, Linear(16,3)], stored (in, out)
    w1 = jax.random.normal(k3, (Cf, Cf), jnp.float32) / math.sqrt(Cf)
    b1 = jax.random.normal(k4, (Cf,), jnp.float32) * 0.1
    w2 = jax.random.normal(k5, (Cf, 3), jnp.float32) / math.sqrt(Cf)
    b2 = jax.random.normal(k6, (3,), jnp.float32) * 0.1

    out = v60_image_level_enhancement(feat, low, w1, b1, w2, b2)
    out = jax.block_until_ready(out)

    # Pure-JAX reference
    gap = feat.reshape(B, Cf, -1).mean(-1)
    h = gap @ w1 + b1
    h = jnp.where(h > 0, h, LEAKY_SLOPE * h)
    p = h @ w2 + b2
    log_alpha = (jnp.tanh(p) * 0.5 + 0.5) * (LOG_R - LOG_L) + LOG_L
    a = jnp.exp(log_alpha)[:, :, None, None]
    ref = (a + 1.0) * low / (low + a)

    assert out.shape == ref.shape and out.dtype == low.dtype
    assert jnp.allclose(out, ref, atol=1e-5, rtol=1e-5)

    print("KERNEL_OK")
</pallas_src>

<mosaic_0001>
module attributes {stable_mosaic.version = 11 : i64} {
  func.func @_param_kernel(%arg0: i32, %arg1: memref<2x16x64xf32, #tpu.memory_space<vmem>>, %arg2: memref<16x16xf32, #tpu.memory_space<vmem>>, %arg3: memref<1x16xf32, #tpu.memory_space<vmem>>, %arg4: memref<16x3xf32, #tpu.memory_space<vmem>>, %arg5: memref<1x3xf32, #tpu.memory_space<vmem>>, %arg6: memref<2x3xf32, #tpu.memory_space<vmem>>, %arg7: memref<2x16xf32, #tpu.memory_space<vmem>>) attributes {dimension_semantics = [#tpu.dimension_semantics<arbitrary>], iteration_bounds = array<i64: 1>, scalar_prefetch = 0 : i64, scratch_operands = 1 : i64, tpu.core_type = #tpu.core_type<tc>, window_params = [{transform_indices = @transform_0, window_bounds = array<i64: 2, 16, 64>}, {pipeline_mode = #tpu.pipeline_mode<synchronous>, transform_indices = @transform_1, window_bounds = array<i64: 16, 16>}, {pipeline_mode = #tpu.pipeline_mode<synchronous>, transform_indices = @transform_2, window_bounds = array<i64: 1, 16>}, {pipeline_mode = #tpu.pipeline_mode<synchronous>, transform_indices = @transform_3, window_bounds = array<i64: 16, 3>}, {pipeline_mode = #tpu.pipeline_mode<synchronous>, transform_indices = @transform_4, window_bounds = array<i64: 1, 3>}, {pipeline_mode = #tpu.pipeline_mode<synchronous>, transform_indices = @transform_5, window_bounds = array<i64: 2, 3>}]} {
    %c0_i32 = arith.constant 0 : i32
    %0 = arith.cmpi eq, %arg0, %c0_i32 : i32
    %1 = arith.extui %0 : i1 to i32
    %c0_i32_0 = arith.constant 0 : i32
    %2 = arith.cmpi ne, %1, %c0_i32_0 : i32
    scf.if %2 {
      %cst_9 = arith.constant 0.000000e+00 : f32
      %11 = vector.broadcast %cst_9 : f32 to vector<2x16xf32>
      %c0_10 = arith.constant 0 : index
      %c0_11 = arith.constant 0 : index
      %12 = vector.load %arg7[%c0_10, %c0_11] : memref<2x16xf32, #tpu.memory_space<vmem>>, vector<2x16xf32>
      tpu.vector_store %arg7[%c0_10, %c0_11], %11 {strides = array<i32>} : memref<2x16xf32, #tpu.memory_space<vmem>>, vector<2x16xf32>,
    } else {
    }
    %c0 = arith.constant 0 : index
    %c0_1 = arith.constant 0 : index
    %c0_2 = arith.constant 0 : index
    %3 = vector.load %arg1[%c0, %c0_1, %c0_2] : memref<2x16x64xf32, #tpu.memory_space<vmem>>, vector<2x16x64xf32>
    %c0_3 = arith.constant 0 : index
    %c0_4 = arith.constant 0 : index
    %4 = vector.load %arg7[%c0_3, %c0_4] : memref<2x16xf32, #tpu.memory_space<vmem>>, vector<2x16xf32>
    %cst = arith.constant dense<0.000000e+00> : vector<2x16xf32>
    %5 = vector.multi_reduction <add>, %3, %cst [2] : vector<2x16x64xf32> to vector<2x16xf32>
    %6 = arith.addf %4, %5 : vector<2x16xf32>
    %c0_5 = arith.constant 0 : index
    %c0_6 = arith.constant 0 : index
    %7 = vector.load %arg7[%c0_5, %c0_6] : memref<2x16xf32, #tpu.memory_space<vmem>>, vector<2x16xf32>
    tpu.vector_store %arg7[%c0_5, %c0_6], %6 {strides = array<i32>} : memref<2x16xf32, #tpu.memory_space<vmem>>, vector<2x16xf32>,
    %c0_i32_7 = arith.constant 0 : i32
    %8 = arith.cmpi eq, %arg0, %c0_i32_7 : i32
    %9 = arith.extui %8 : i1 to i32
    %c0_i32_8 = arith.constant 0 : i32
    %10 = arith.cmpi ne, %9, %c0_i32_8 : i32
    scf.if %10 {
      %c0_9 = arith.constant 0 : index
      %c0_10 = arith.constant 0 : index
      %11 = vector.load %arg7[%c0_9, %c0_10] : memref<2x16xf32, #tpu.memory_space<vmem>>, vector<2x16xf32>
      %cst_11 = arith.constant 1.562500e-02 : f32
      %12 = vector.broadcast %cst_11 : f32 to vector<2x16xf32>
      %13 = arith.mulf %11, %12 : vector<2x16xf32>
      %c0_12 = arith.constant 0 : index
      %c0_13 = arith.constant 0 : index
      %14 = vector.load %arg2[%c0_12, %c0_13] : memref<16x16xf32, #tpu.memory_space<vmem>>, vector<16x16xf32>
      %cst_14 = arith.constant dense<0.000000e+00> : vector<2x16xf32>
      %15 = tpu.matmul %13, %14, %cst_14 {dimension_numbers = #tpu.dot_dimension_numbers<[1], [0], [0], [1], [0, 0, 1, 1], [], []>} : vector<2x16xf32>, vector<16x16xf32>, vector<2x16xf32> -> vector<2x16xf32>
      %c0_15 = arith.constant 0 : index
      %c0_16 = arith.constant 0 : index
      %16 = vector.load %arg3[%c0_15, %c0_16] : memref<1x16xf32, #tpu.memory_space<vmem>>, vector<1x16xf32>
      %17 = vector.broadcast %16 : vector<1x16xf32> to vector<2x16xf32>
      %18 = arith.addf %15, %17 : vector<2x16xf32>
      %cst_17 = arith.constant 0.000000e+00 : f32
      %19 = vector.broadcast %cst_17 : f32 to vector<2x16xf32>
      %20 = arith.cmpf ogt, %18, %19 : vector<2x16xf32>
      %cst_18 = arith.constant 0.00999999977 : f32
      %21 = vector.broadcast %cst_18 : f32 to vector<2x16xf32>
      %22 = arith.mulf %21, %18 : vector<2x16xf32>
      %23 = arith.select %20, %18, %22 : vector<2x16xi1>, vector<2x16xf32>
      %c0_19 = arith.constant 0 : index
      %c0_20 = arith.constant 0 : index
      %24 = vector.load %arg4[%c0_19, %c0_20] : memref<16x3xf32, #tpu.memory_space<vmem>>, vector<16x3xf32>
      %cst_21 = arith.constant dense<0.000000e+00> : vector<2x3xf32>
      %25 = tpu.matmul %23, %24, %cst_21 {dimension_numbers = #tpu.dot_dimension_numbers<[1], [0], [0], [1], [0, 0, 1, 1], [], []>} : vector<2x16xf32>, vector<16x3xf32>, vector<2x3xf32> -> vector<2x3xf32>
      %c0_22 = arith.constant 0 : index
      %c0_23 = arith.constant 0 : index
      %26 = vector.load %arg5[%c0_22, %c0_23] : memref<1x3xf32, #tpu.memory_space<vmem>>, vector<1x3xf32>
      %27 = vector.broadcast %26 : vector<1x3xf32> to vector<2x3xf32>
      %28 = arith.addf %25, %27 : vector<2x3xf32>
      %29 = math.tanh %28 : vector<2x3xf32>
      %cst_24 = arith.constant 5.000000e-01 : f32
      %30 = vector.broadcast %cst_24 : f32 to vector<2x3xf32>
      %31 = arith.mulf %29, %30 : vector<2x3xf32>
      %cst_25 = arith.constant 5.000000e-01 : f32
      %32 = vector.broadcast %cst_25 : f32 to vector<2x3xf32>
      %33 = arith.addf %31, %32 : vector<2x3xf32>
      %cst_26 = arith.constant 11.5129251 : f32
      %34 = vector.broadcast %cst_26 : f32 to vector<2x3xf32>
      %35 = arith.mulf %33, %34 : vector<2x3xf32>
      %cst_27 = arith.constant -6.90775537 : f32
      %36 = vector.broadcast %cst_27 : f32 to vector<2x3xf32>
      %37 = arith.addf %35, %36 : vector<2x3xf32>
      %38 = math.exp %37 : vector<2x3xf32>
      %c0_28 = arith.constant 0 : index
      %c0_29 = arith.constant 0 : index
      %39 = vector.load %arg6[%c0_28, %c0_29] : memref<2x3xf32, #tpu.memory_space<vmem>>, vector<2x3xf32>
      tpu.vector_store %arg6[%c0_28, %c0_29], %38 {strides = array<i32>} : memref<2x3xf32, #tpu.memory_space<vmem>>, vector<2x3xf32>,
    } else {
    }
    return
  }
  func.func @transform_0(%arg0: i32) -> (i32, i32, i32) {
    %c0_i32 = arith.constant 0 : i32
    %c0_i32_0 = arith.constant 0 : i32
    %c0_i32_1 = arith.constant 0 : i32
    return %c0_i32, %c0_i32_0, %arg0 : i32, i32, i32
  }
  func.func @transform_1(%arg0: i32) -> (i32, i32) {
    %c0_i32 = arith.constant 0 : i32
    %c0_i32_0 = arith.constant 0 : i32
    %c0_i32_1 = arith.constant 0 : i32
    return %c0_i32, %c0_i32_0 : i32, i32
  }
  func.func @transform_2(%arg0: i32) -> (i32, i32) {
    %c0_i32 = arith.constant 0 : i32
    %c0_i32_0 = arith.constant 0 : i32
    %c0_i32_1 = arith.constant 0 : i32
    return %c0_i32, %c0_i32_0 : i32, i32
  }
  func.func @transform_3(%arg0: i32) -> (i32, i32) {
    %c0_i32 = arith.constant 0 : i32
    %c0_i32_0 = arith.constant 0 : i32
    %c0_i32_1 = arith.constant 0 : i32
    return %c0_i32, %c0_i32_0 : i32, i32
  }
  func.func @transform_4(%arg0: i32) -> (i32, i32) {
    %c0_i32 = arith.constant 0 : i32
    %c0_i32_0 = arith.constant 0 : i32
    %c0_i32_1 = arith.constant 0 : i32
    return %c0_i32, %c0_i32_0 : i32, i32
  }
  func.func @transform_5(%arg0: i32) -> (i32, i32) {
    %c0_i32 = arith.constant 0 : i32
    %c0_i32_0 = arith.constant 0 : i32
    %c0_i32_1 = arith.constant 0 : i32
    return %c0_i32, %c0_i32_0 : i32, i32
  }
}

</mosaic_0001>

<bundles_post_ra>
// kernel: tpu_custom_call.1
= control target key start
LH: loop header
LB: loop body
LE: loop exit
PB: predicated region body
PF: predicated region fallthrough
CT: control target
= control target key end

     0   :  { %10 = vsyncpa [#allocation4], 0  ;;  %s458_s0 = inlined_call_operand.hbm [shape: f32[2,16,64], index: 0, kind: input, shape index: {}]   ;;  %s459_s1 = inlined_call_operand.vmem [shape: f32[16,16], index: 1, kind: input, shape index: {}]   ;;  %s460_s2 = inlined_call_operand.vmem [shape: f32[1,16], index: 2, kind: input, shape index: {}]   ;;  %s461_s3 = inlined_call_operand.vmem [shape: f32[16,3], index: 3, kind: input, shape index: {}]   ;;  %s462_s4 = inlined_call_operand.vmem [shape: f32[1,3], index: 4, kind: input, shape index: {}]   ;;  %s463_s5 = inlined_call_operand.hbm [shape: f32[2,3], index: 5, kind: output, shape index: {}]  }
   0x1   :  { %11 = vsyncpa [#allocation5], 0  ;;  %s377_s18 = smov [#allocation3]   ;;  %s329_s22 = scalar_lea.hbm %s458_s0, 512 }
   0x2   :  { %s17_s19 = sshll.u32 %s377_s18, 4  ;;  %p330_p0 = scmp.ne.s32.totalorder %s458_s0, %s329_s22  ;;  %s18_s19 = int_to_ptr.vmem [resolvable:$true] %s17_s19 }
   0x3   :  { %p333_p1 = scmp.lt.u32.totalorder %s329_s22, %s458_s0 }
   0x5   :  { %p335_p2 = pnand %p333_p1, %p330_p0 }
   0x7   :  { %338 = shalt.err (!%p335_p2)
}
   0x8   :  { %s339_s27 = scalar_lea.vmem %s18_s19, 512  ;;  %p344_p4 = scmp.lt.s32.totalorder %s18_s19, %s18_s19 }
   0x9   :  { %p340_p3 = scmp.ne.s32.totalorder %s18_s19, %s339_s27  ;;  %p345_p5 = scmp.lt.s32.totalorder %s339_s27, %s339_s27 }
   0xb   :  { %p346_p6 = por %p345_p5, %p344_p4 }
   0xd   :  { %p347_p7 = pnand %p346_p6, %p340_p3 }
   0xf   :  { %350 = shalt.err (!%p347_p7)
}
  0x10   :  { %s378_s28 = smov 128   ;;  %s379_s29 = smov 8  }
  0x11   :  { %23 = dma.hbm_to_vmem [thread:$0]  %s458_s0, 512, %s18_s19, [#allocation4], %s378_s28, %s378_s28, %s379_s29  }
  0x12   :  { %373 = dma.done.wait [#allocation4], 512  }
  0x13   :  { %374 = vsyncadd [#allocation4], 4294966784  ;;  %vm46_vm0 = vcmask 523264   ;;  %v43_v0 = vld [vmem:[#allocation3 + $0x10] sm:$0xff]  ;;  %v41_v1 = vld [vmem:[#allocation3] sm:$0xff]  ;;  %vm39_vm1 = vcmask 123904   ;;  %v63_v13 = vlaneseq }
  0x14   :  { %v44_v2 = vld [vmem:[#allocation3 + $0x18] sm:$0xff]  ;;  %v53_v3 = vsel %vm46_vm0, %v43_v0, 0.0  ;;  %v47_v4 = vsel %vm46_vm0, %v41_v1, 0.0  ;;  %v42_v5 = vld [vmem:[#allocation3 + $0x8] sm:$0xff]  ;;  %v380_v8 = vmov 0.0   ;;  %v381_v11 = vmov 0.0|0.0  }
  0x15   :  { %54 = vadd.xlane.f32.xlu1 %v53_v3  ;;  %48 = vadd.xlane.f32.xlu0 %v47_v4  ;;  %v56_v6 = vsel %vm46_vm0, %v44_v2, 0.0  ;;  %v50_v7 = vsel %vm46_vm0, %v42_v5, 0.0  ;;  %40 = vst.msk [vmem:[#allocation2] sm:$0x3] %vm39_vm1, %v380_v8  ;;  %v96_v9 = vld [vmem:[%s459_s1] sm:$0xff]  ;;  %v97_v10 = vld [vmem:[%s459_s1 + $0x8] sm:$0xff] }
  0x16   :  { %312 = vmatprep.subr.bf16.mxu0 %v381_v11  ;;  %v313_v12 = vpack.c.bf16 %v97_v10, %v96_v9  ;;  %315 = vmatprep.subr.bf16.mxu1 %v381_v11  ;;  %vm382_vm2 = vmmov 0   ;;  %v64_v14 = vand.u32 127, %v63_v13  ;;  %v66_v15 = vshrl.u32 %v63_v13, 7  ;;  %v182_v34 = vld [vmem:[%s461_s3] sm:$0xff]  ;;  %v183_v35 = vld [vmem:[%s461_s3 + $0x8] sm:$0xff] }
  0x17   :  { %302 = vmatprep.mubr.msk.f32.mxu0 %vm382_vm2, %v380_v8  ;;  %309 = vmatprep.mubr.msk.f32.mxu1 %vm382_vm2, %v380_v8  ;;  %vm74_vm3 = vcmask 130112   ;;  %vm85_vm4 = vcmask 1041409   ;;  %vm105_vm5 = vcmask 130048   ;;  %v316_v36 = vpack.c.bf16 %v183_v35, %v182_v34  ;;  %v288_v37 = vld [vmem:[%s460_s2] ss:$0 sm:$0xff]  ;;  %s383_s2 = smov [#allocation6]  }
  0x18   :  { %314 = vmatpush3.bf16.msra.mxu0 %v313_v12  ;;  %v69_v16 = vadd.s32 4294967288, %v64_v14  ;;  %v67_v19 = vsub.s32 %v64_v14, %v66_v15  ;;  %v290_v43 = vld [vmem:[%s462_s4] ss:$0 sm:$0xff]  ;;  %s279_s3 = sshll.u32 %s383_s2, 4  ;;  %vm271_vm7 = vcmask 17408   ;;  %s280_s3 = int_to_ptr.vmem [resolvable:$true] %s279_s3 }
  0x19   :  { %57 = vadd.xlane.f32.xlu1 %v56_v6  ;;  %51 = vadd.xlane.f32.xlu0 %v50_v7  ;;  %s351_s17 = scalar_lea.vmem %s280_s3, 32  ;;  %p356_p9 = scmp.lt.s32.totalorder %s280_s3, %s280_s3 }
  0x1a   :  { %v72_v20 = vsub.s32 %v69_v16, %v66_v15  ;;  %317 = vmatpush3.bf16.msra.mxu1 %v316_v36  ;;  %p352_p8 = scmp.ne.s32.totalorder %s280_s3, %s351_s17  ;;  %p357_p10 = scmp.lt.s32.totalorder %s351_s17, %s351_s17 }
  0x1c   :  { %v45_v27 = vld [vmem:[#allocation2] sm:$0x3]  ;;  %p358_p11 = por %p357_p10, %p356_p9 }
  0x1e   :  { %p359_p12 = pnand %p358_p11, %p352_p8 }
  0xa2   :  { %v55_v17 = vpop.xlane.xlu1 %54  ;;  %v49_v18 = vpop.xlane.xlu0 %48 }
  0xa3   :  { %v79_v23 = vrot.slane %v55_v17, %v67_v19  ;;  %v68_v24 = vrot.slane %v49_v18, %v67_v19 }
  0xa6   :  { %v58_v21 = vpop.xlane.xlu1 %57  ;;  %v52_v22 = vpop.xlane.xlu0 %51 }
  0xa7   :  { %v83_v25 = vrot.slane %v58_v21, %v72_v20  ;;  %v73_v26 = vrot.slane %v52_v22, %v72_v20 }
  0xa9   :  { %v84_v28 = vsel %vm74_vm3, %v83_v25, %v79_v23  ;;  %v75_v29 = vsel %vm74_vm3, %v73_v26, %v68_v24 }
  0xaa   :  { %v86_v30 = vsel %vm85_vm4, %v84_v28, %v75_v29 }
  0xab   :  { %v88_v31 = vadd.f32 %v86_v30, %v45_v27 }
  0xad   :  { %90 = vst.msk [vmem:[#allocation2] sm:$0x3] %vm39_vm1, %v88_v31 }
  0xb4   :  { %v94_v32 = vld [vmem:[#allocation2] sm:$0x3] }
  0xb5   :  { %v95_v33 = vmul.f32 0.015625, %v94_v32 }
  0xb7   :  { %303 = vmatmul.mubr.msk.f32.vlgmr.msra.gmra.mrb[0].mxu0 %vm105_vm5, %v95_v33 }
 0x18a   :  { %v175_v38 = vpop.f32.mrb[0].mxu0 }
 0x18b   :  { %v176_v39 = vadd.f32 %v288_v37, %v175_v38  ;;  %v304_v40 = vpop.f32.mrb[1].mxu0 }
 0x18d   :  { %vm179_vm6 = vcmp.gt.f32.partialorder %v176_v39, 0.0  ;;  %v180_v41 = vmul.f32 0.01, %v176_v39 }
 0x18f   :  { %v181_v42 = vsel %vm179_vm6, %v176_v39, %v180_v41 }
 0x190   :  { %310 = vmatmul.mubr.msk.f32.vlgmr.msra.gmra.mrb[0].mxu1 %vm105_vm5, %v181_v42 }
 0x263   :  { %v260_v44 = vpop.f32.mrb[0].mxu1 }
 0x264   :  { %v261_v45 = vadd.f32 %v290_v43, %v260_v44  ;;  %v311_v46 = vpop.f32.mrb[1].mxu1 }
 0x266   :  { %325 = vtanh.f32 %v261_v45 }
 0x270   :  { %v326_v47 = vpop.eup %325 }
 0x271   :  { %v265_v48 = vmul.f32 0.5, %v326_v47 }
 0x273   :  { %v266_v49 = vadd.f32 0.5, %v265_v48 }
 0x275   :  { %v267_v50 = vmul.f32 11.512925, %v266_v49 }
 0x277   :  { %v268_v51 = vadd.f32 -6.9077554, %v267_v50 }
 0x279   :  { %v269_v52 = vmul.f32 1.442695, %v268_v51 }
 0x27b   :  { %327 = vpow2.f32 %v269_v52 }
 0x285   :  { %v328_v53 = vpop.eup %327 }
 0x286   :  { %272 = vst.msk [vmem:[#allocation6] sm:$0x3] %vm271_vm7, %v328_v53 }
 0x287   :  { %362 = shalt.err (!%p359_p12)
}
 0x288   :  { %s363_s19 = scalar_lea.hbm %s463_s5, 32 }
 0x289   :  { %p364_p13 = scmp.ne.s32.totalorder %s463_s5, %s363_s19  ;;  %p367_p0 = scmp.lt.u32.totalorder %s363_s19, %s463_s5 }
 0x28b   :  { %p369_p1 = pnand %p367_p0, %p364_p13 }
 0x28d   :  { %372 = shalt.err (!%p369_p1)
}
 0x28e   :  { %282 = dma.vmem_to_hbm [thread:$0]  %s280_s3, 32, %s463_s5, [#allocation5]  }
 0x28f   :  { %375 = dma.done.wait [#allocation5], 32  }
 0x290   :  { %376 = vsyncadd [#allocation5], 4294967264 }
 0x291   :  { %286 = vsyncpa [#allocation4], 1 }
 0x292   :  { %287 = vsyncpa [#allocation5], 1 }

</bundles_post_ra>
